<compile_context>
chip_gen: v6e
topology: v6e:2x2x1
jax: 0.10.0
libtpu: 0.0.40
codegen_flags: <defaults>
</compile_context>

<pallas_src>
import math
import jax
import jax.numpy as jnp
from jax.experimental import pallas as pl
from jax.experimental.pallas import tpu as pltpu


def _round_up(x, m):
    return (x + m - 1) // m * m


def _cdiv(a, b):
    return -(-a // b)


def _vmem_budget_bytes():
    """Per-generation VMEM budget: ~75% of physical (96 MiB v5e/v6e, 48 MiB v7x)."""
    try:
        cap = int(pltpu.get_tpu_info().vmem_capacity_bytes)
    except Exception:
        cap = 64 << 20          # conservative fallback
    return (3 * cap) // 4


# ---------------------------------------------------------------------------
# Kernel 1: nn.GRUCell update (hidden_step for the single GRU layer).
# ---------------------------------------------------------------------------
def gru_cell_kernel(e_ref, h_ref, wih_ref, whh_ref, bih_ref, bhh_ref,
                    hn_ref, hb_ref):
    """e [B,D] bf16, h [B,D] f32, Wih^T/Whh^T [D,3D] bf16 (gate order [r|z|n]),
    bih/bhh [1,3D] f32.  Outputs: hn [B,D] f32 (new hidden), hb [B,D] bf16."""
    e = e_ref[...]
    h = h_ref[...]
    D = h.shape[-1]

    # PyTorch nn.GRUCell semantics:
    #   r = sigmoid(W_ir x + b_ir + W_hr h + b_hr)
    #   z = sigmoid(W_iz x + b_iz + W_hz h + b_hz)
    #   n = tanh  (W_in x + b_in + r * (W_hn h + b_hn))
    #   h' = (1 - z) * n + z * h
    gi = jnp.dot(e, wih_ref[...],
                 preferred_element_type=jnp.float32) + bih_ref[...]
    gh = jnp.dot(h.astype(jnp.bfloat16), whh_ref[...],
                 preferred_element_type=jnp.float32) + bhh_ref[...]

    r = jax.nn.sigmoid(gi[:, 0:D] + gh[:, 0:D])
    z = jax.nn.sigmoid(gi[:, D:2 * D] + gh[:, D:2 * D])
    n = jnp.tanh(gi[:, 2 * D:3 * D] + r * gh[:, 2 * D:3 * D])
    h_new = (1.0 - z) * n + z * h

    hn_ref[...] = h_new
    hb_ref[...] = h_new.astype(jnp.bfloat16)


# ---------------------------------------------------------------------------
# Kernel 2: candidate-item scoring, tiled over the BY axis.
# ---------------------------------------------------------------------------
def score_kernel(hb_ref, o_ref, by_ref, r_ref):
    """hb [B,D] bf16 (resident), o [TN,D] bf16 (streamed tile),
    by [1,TN] f32 (streamed tile), r [B,TN] out (bf16 or f32)."""
    s = jax.lax.dot_general(
        hb_ref[...], o_ref[...],
        dimension_numbers=(((1,), (1,)), ((), ())),   # contract D of both ("NT")
        preferred_element_type=jnp.float32)
    r_ref[...] = (s + by_ref[...]).astype(r_ref.dtype)


def gru4rec_forward(params, X, H0, Y, *, tn_max=8192, score_dtype=jnp.bfloat16):
    """GRU4RecModel.forward (constrained embedding, single GRU layer, eval mode).

    X, Y: int32 item-id vectors.  H0: [B, D] f32 hidden state of the layer.
    Returns (R [B, len(Y)] scores, H_new [B, D] f32).
    """
    Wy, By = params["Wy"], params["By"]
    Wih_t, Whh_t = params["Wih_t"], params["Whh_t"]
    bih, bhh = params["bih"], params["bhh"]

    B = X.shape[0]
    BY = Y.shape[0]
    D = H0.shape[-1]
    # TODO(synk): for D not a multiple of 128, pad D (per-gate) in glue so the
    # r/z/n slices stay lane-tile aligned; D=128-multiples hit the fast path.

    out_bytes = jnp.dtype(score_dtype).itemsize

    # --- padding / tile selection ---------------------------------------------
    B_pad = _round_up(B, 16)                      # bf16 sublane multiple

    vmem_budget = _vmem_budget_bytes()
    resident_bytes = B_pad * D * 2                # h_new bf16 resident in VMEM
    per_col = 2 * (D * 2 + 4 + B_pad * out_bytes)   # double-buffered O/By/R per column
    avail = max(vmem_budget - resident_bytes - (4 << 20), per_col * 128)
    tn_cap = max(min(tn_max, avail // per_col) // 128 * 128, 128)

    # Divisor-friendly TN: pad BY to 128 first, then split into near-equal tiles
    # so padding waste stays within one lane tile per tile (not up to TN-128).
    BY128 = _round_up(BY, 128)
    n_tiles = _cdiv(BY128, tn_cap)
    TN = _round_up(_cdiv(BY128, n_tiles), 128)
    BY_pad = n_tiles * TN

    Xp = jnp.pad(X, (0, B_pad - B)) if B_pad != B else X
    Yp = jnp.pad(Y, (0, BY_pad - BY)) if BY_pad != BY else Y
    H0p = jnp.pad(H0, ((0, B_pad - B), (0, 0))) if B_pad != B else H0

    # embed_constrained (nn.Embedding gathers = plain-JAX glue).
    E = Wy[Xp]                                   # [B_pad, D]    bf16
    O = Wy[Yp]                                   # [BY_pad, D]   bf16 (no transpose)
    By_row = By[Yp].reshape(1, BY_pad)           # [1, BY_pad]   f32  (== B.T)
    # TODO(synk): gather candidate rows HBM->VMEM inside the kernel (scalar-
    # prefetched Y + manual DMA gather) to avoid materializing O at very large BY.

    # --- kernel 1: GRUCell (runs once, tiny) -----------------------------------
    Hn, Hb = pl.pallas_call(
        gru_cell_kernel,
        out_shape=(jax.ShapeDtypeStruct((B_pad, D), jnp.float32),
                   jax.ShapeDtypeStruct((B_pad, D), jnp.bfloat16)),
        grid=(1,),
        in_specs=[
            pl.BlockSpec((B_pad, D), lambda i: (0, 0)),      # E
            pl.BlockSpec((B_pad, D), lambda i: (0, 0)),      # H0
            pl.BlockSpec((D, 3 * D), lambda i: (0, 0)),      # Wih^T
            pl.BlockSpec((D, 3 * D), lambda i: (0, 0)),      # Whh^T
            pl.BlockSpec((1, 3 * D), lambda i: (0, 0)),      # bih
            pl.BlockSpec((1, 3 * D), lambda i: (0, 0)),      # bhh
        ],
        out_specs=(
            pl.BlockSpec((B_pad, D), lambda i: (0, 0)),      # Hn (f32)
            pl.BlockSpec((B_pad, D), lambda i: (0, 0)),      # Hb (bf16)
        ),
        input_output_aliases={1: 0},   # reuse the H0 buffer for Hn
        compiler_params=pltpu.CompilerParams(
            dimension_semantics=("arbitrary",),
        ),
        cost_estimate=pl.CostEstimate(
            flops=2 * B_pad * D * 6 * D,
            transcendentals=3 * B_pad * D,
            bytes_accessed=(B_pad * D * (2 + 4 + 4 + 2)
                            + 2 * D * 3 * D * 2 + 2 * 3 * D * 4),
        ),
    )(E, H0p, Wih_t, Whh_t, bih, bhh)

    # --- kernel 2: candidate scoring, BY axis "parallel" (megacore on v7x) -----
    stream_bytes = 2 * (TN * D * 2 + TN * 4 + B_pad * TN * out_bytes)
    vmem_limit = int(min(max(resident_bytes + stream_bytes + (4 << 20), 32 << 20),
                         vmem_budget))

    R = pl.pallas_call(
        score_kernel,
        out_shape=jax.ShapeDtypeStruct((B_pad, BY_pad), score_dtype),
        grid_spec=pltpu.PrefetchScalarGridSpec(
            num_scalar_prefetch=0,
            grid=(n_tiles,),
            in_specs=[
                pl.BlockSpec((B_pad, D), lambda j: (0, 0)),  # h_new bf16 (resident)
                pl.BlockSpec((TN, D), lambda j: (j, 0)),     # O tile     (streamed)
                pl.BlockSpec((1, TN), lambda j: (0, j)),     # By tile    (streamed)
            ],
            out_specs=pl.BlockSpec((B_pad, TN), lambda j: (0, j)),
        ),
        compiler_params=pltpu.CompilerParams(
            dimension_semantics=("parallel",),
            vmem_limit_bytes=vmem_limit,
        ),
        cost_estimate=pl.CostEstimate(
            flops=2 * B_pad * D * BY_pad,
            transcendentals=0,
            bytes_accessed=(B_pad * D * 2 + BY_pad * D * 2 + BY_pad * 4
                            + B_pad * BY_pad * out_bytes),
        ),
    )(Hb, O, By_row)

    return R[:B, :BY], Hn[:B]


# ---------------------------------------------------------------------------
# Parameter construction / pure-JAX reference (for the self-check).
# ---------------------------------------------------------------------------
def _init_uniform(key, shape, dim0_scale=1, dim1_scale=1):
    # mirrors init_parameter_matrix
    sigma = math.sqrt(6.0 / (shape[0] / dim0_scale + shape[1] / dim1_scale))
    return jax.random.uniform(key, shape, jnp.float32, -sigma, sigma)


def make_params(n_items, hidden, key):
    k1, k2, k3 = jax.random.split(key, 3)
    Wy = _init_uniform(k1, (n_items, hidden))            # nn.Embedding(n_items, hidden)
    By = jnp.zeros((n_items, 1), jnp.float32)            # nn.Embedding(n_items, 1), zeros
    # GRUCell weights: PyTorch shapes (3*hidden, hidden); stored transposed so the
    # kernel computes x @ W.  bf16 halves HBM traffic / VMEM; accumulation is f32.
    Wih = _init_uniform(k2, (3 * hidden, hidden), dim1_scale=3)
    Whh = _init_uniform(k3, (3 * hidden, hidden), dim1_scale=3)
    bih = jnp.zeros((1, 3 * hidden), jnp.float32)
    bhh = jnp.zeros((1, 3 * hidden), jnp.float32)
    return {
        "Wy": Wy.astype(jnp.bfloat16), "By": By,
        "Wih_t": Wih.T.astype(jnp.bfloat16), "Whh_t": Whh.T.astype(jnp.bfloat16),
        "bih": bih, "bhh": bhh,
    }


def _reference_forward(params, X, H0, Y):
    # pure-JAX reference with the same mixed-precision policy (sanity check)
    Wy, By = params["Wy"], params["By"]
    E, O = Wy[X], Wy[Y]
    B_y = By[Y].reshape(1, -1)
    D = H0.shape[-1]
    gi = jnp.dot(E, params["Wih_t"],
                 preferred_element_type=jnp.float32) + params["bih"]
    gh = jnp.dot(H0.astype(jnp.bfloat16), params["Whh_t"],
                 preferred_element_type=jnp.float32) + params["bhh"]
    r = jax.nn.sigmoid(gi[:, :D] + gh[:, :D])
    z = jax.nn.sigmoid(gi[:, D:2 * D] + gh[:, D:2 * D])
    n = jnp.tanh(gi[:, 2 * D:] + r * gh[:, 2 * D:])
    h_new = (1.0 - z) * n + z * H0
    R = jnp.dot(h_new.astype(jnp.bfloat16), O.T,
                preferred_element_type=jnp.float32) + B_y
    return R, h_new


if __name__ == "__main__":
    n_items = 64
    hidden = 128          # layers = [128]
    batch = 8

    key = jax.random.PRNGKey(0)
    kp, kx, ky, kh = jax.random.split(key, 4)

    params = make_params(n_items, hidden, kp)
    X = jax.random.randint(kx, (batch,), 0, n_items, dtype=jnp.int32)
    Y = jax.random.randint(ky, (batch,), 0, n_items, dtype=jnp.int32)
    H0 = jax.random.normal(kh, (batch, hidden), jnp.float32) * 0.1

    R, H_new = jax.jit(gru4rec_forward)(params, X, H0, Y)
    jax.block_until_ready((R, H_new))

    R_ref, H_ref = _reference_forward(params, X, H0, Y)
    assert R.shape == (batch, batch) and H_new.shape == (batch, hidden)
    assert jnp.allclose(H_new, H_ref, atol=1e-3), "hidden mismatch vs reference"
    assert jnp.allclose(R.astype(jnp.float32), R_ref.astype(jnp.float32),
                        atol=5e-2, rtol=2e-2), "score mismatch vs reference"

    print("KERNEL_OK")
</pallas_src>

<mosaic_0001>
module attributes {stable_mosaic.version = 11 : i64} {
  func.func @gru_cell_kernel(%arg0: i32, %arg1: memref<16x128xbf16, #tpu.memory_space<vmem>>, %arg2: memref<16x128xf32, #tpu.memory_space<vmem>>, %arg3: memref<128x384xbf16, #tpu.memory_space<vmem>>, %arg4: memref<128x384xbf16, #tpu.memory_space<vmem>>, %arg5: memref<1x384xf32, #tpu.memory_space<vmem>>, %arg6: memref<1x384xf32, #tpu.memory_space<vmem>>, %arg7: memref<16x128xf32, #tpu.memory_space<vmem>>, %arg8: memref<16x128xbf16, #tpu.memory_space<vmem>>) attributes {dimension_semantics = [#tpu.dimension_semantics<arbitrary>], iteration_bounds = array<i64: 1>, scalar_prefetch = 0 : i64, scratch_operands = 0 : i64, tpu.core_type = #tpu.core_type<tc>, window_params = [{pipeline_mode = #tpu.pipeline_mode<synchronous>, transform_indices = @transform_0, window_bounds = array<i64: 16, 128>}, {pipeline_mode = #tpu.pipeline_mode<synchronous>, transform_indices = @transform_1, window_bounds = array<i64: 16, 128>}, {pipeline_mode = #tpu.pipeline_mode<synchronous>, transform_indices = @transform_2, window_bounds = array<i64: 128, 384>}, {pipeline_mode = #tpu.pipeline_mode<synchronous>, transform_indices = @transform_3, window_bounds = array<i64: 128, 384>}, {pipeline_mode = #tpu.pipeline_mode<synchronous>, transform_indices = @transform_4, window_bounds = array<i64: 1, 384>}, {pipeline_mode = #tpu.pipeline_mode<synchronous>, transform_indices = @transform_5, window_bounds = array<i64: 1, 384>}, {pipeline_mode = #tpu.pipeline_mode<synchronous>, transform_indices = @transform_6, window_bounds = array<i64: 16, 128>}, {pipeline_mode = #tpu.pipeline_mode<synchronous>, transform_indices = @transform_7, window_bounds = array<i64: 16, 128>}]} {
    %c0 = arith.constant 0 : index
    %c0_0 = arith.constant 0 : index
    %0 = vector.load %arg1[%c0, %c0_0] : memref<16x128xbf16, #tpu.memory_space<vmem>>, vector<16x128xbf16>
    %c0_1 = arith.constant 0 : index
    %c0_2 = arith.constant 0 : index
    %1 = vector.load %arg2[%c0_1, %c0_2] : memref<16x128xf32, #tpu.memory_space<vmem>>, vector<16x128xf32>
    %c0_3 = arith.constant 0 : index
    %c0_4 = arith.constant 0 : index
    %2 = vector.load %arg3[%c0_3, %c0_4] : memref<128x384xbf16, #tpu.memory_space<vmem>>, vector<128x384xbf16>
    %cst = arith.constant dense<0.000000e+00> : vector<16x384xf32>
    %3 = tpu.matmul %0, %2, %cst {dimension_numbers = #tpu.dot_dimension_numbers<[1], [0], [0], [1], [0, 0, 1, 1], [], []>} : vector<16x128xbf16>, vector<128x384xbf16>, vector<16x384xf32> -> vector<16x384xf32>
    %c0_5 = arith.constant 0 : index
    %c0_6 = arith.constant 0 : index
    %4 = vector.load %arg5[%c0_5, %c0_6] : memref<1x384xf32, #tpu.memory_space<vmem>>, vector<1x384xf32>
    %5 = vector.broadcast %4 : vector<1x384xf32> to vector<16x384xf32>
    %6 = arith.addf %3, %5 : vector<16x384xf32>
    %7 = arith.truncf %1 : vector<16x128xf32> to vector<16x128xbf16>
    %c0_7 = arith.constant 0 : index
    %c0_8 = arith.constant 0 : index
    %8 = vector.load %arg4[%c0_7, %c0_8] : memref<128x384xbf16, #tpu.memory_space<vmem>>, vector<128x384xbf16>
    %cst_9 = arith.constant dense<0.000000e+00> : vector<16x384xf32>
    %9 = tpu.matmul %7, %8, %cst_9 {dimension_numbers = #tpu.dot_dimension_numbers<[1], [0], [0], [1], [0, 0, 1, 1], [], []>} : vector<16x128xbf16>, vector<128x384xbf16>, vector<16x384xf32> -> vector<16x384xf32>
    %c0_10 = arith.constant 0 : index
    %c0_11 = arith.constant 0 : index
    %10 = vector.load %arg6[%c0_10, %c0_11] : memref<1x384xf32, #tpu.memory_space<vmem>>, vector<1x384xf32>
    %11 = vector.broadcast %10 : vector<1x384xf32> to vector<16x384xf32>
    %12 = arith.addf %9, %11 : vector<16x384xf32>
    %13 = vector.extract_strided_slice %6 {offsets = [0, 0], sizes = [16, 128], strides = [1, 1]} : vector<16x384xf32> to vector<16x128xf32>
    %14 = vector.extract_strided_slice %12 {offsets = [0, 0], sizes = [16, 128], strides = [1, 1]} : vector<16x384xf32> to vector<16x128xf32>
    %15 = arith.addf %13, %14 : vector<16x128xf32>
    %16 = arith.negf %15 : vector<16x128xf32>
    %17 = math.exp %16 : vector<16x128xf32>
    %cst_12 = arith.constant 1.000000e+00 : f32
    %18 = vector.broadcast %cst_12 : f32 to vector<16x128xf32>
    %19 = arith.addf %18, %17 : vector<16x128xf32>
    %20 = arith.divf %18, %19 : vector<16x128xf32>
    %21 = vector.extract_strided_slice %6 {offsets = [0, 128], sizes = [16, 128], strides = [1, 1]} : vector<16x384xf32> to vector<16x128xf32>
    %22 = vector.extract_strided_slice %12 {offsets = [0, 128], sizes = [16, 128], strides = [1, 1]} : vector<16x384xf32> to vector<16x128xf32>
    %23 = arith.addf %21, %22 : vector<16x128xf32>
    %24 = arith.negf %23 : vector<16x128xf32>
    %25 = math.exp %24 : vector<16x128xf32>
    %cst_13 = arith.constant 1.000000e+00 : f32
    %26 = vector.broadcast %cst_13 : f32 to vector<16x128xf32>
    %27 = arith.addf %26, %25 : vector<16x128xf32>
    %28 = arith.divf %26, %27 : vector<16x128xf32>
    %29 = vector.extract_strided_slice %6 {offsets = [0, 256], sizes = [16, 128], strides = [1, 1]} : vector<16x384xf32> to vector<16x128xf32>
    %30 = vector.extract_strided_slice %12 {offsets = [0, 256], sizes = [16, 128], strides = [1, 1]} : vector<16x384xf32> to vector<16x128xf32>
    %31 = arith.mulf %20, %30 : vector<16x128xf32>
    %32 = arith.addf %29, %31 : vector<16x128xf32>
    %33 = math.tanh %32 : vector<16x128xf32>
    %cst_14 = arith.constant 1.000000e+00 : f32
    %34 = vector.broadcast %cst_14 : f32 to vector<16x128xf32>
    %35 = arith.subf %34, %28 : vector<16x128xf32>
    %36 = arith.mulf %35, %33 : vector<16x128xf32>
    %37 = arith.mulf %28, %1 : vector<16x128xf32>
    %38 = arith.addf %36, %37 : vector<16x128xf32>
    %c0_15 = arith.constant 0 : index
    %c0_16 = arith.constant 0 : index
    %39 = vector.load %arg7[%c0_15, %c0_16] : memref<16x128xf32, #tpu.memory_space<vmem>>, vector<16x128xf32>
    tpu.vector_store %arg7[%c0_15, %c0_16], %38 {strides = array<i32>} : memref<16x128xf32, #tpu.memory_space<vmem>>, vector<16x128xf32>,
    %40 = arith.truncf %38 : vector<16x128xf32> to vector<16x128xbf16>
    %c0_17 = arith.constant 0 : index
    %c0_18 = arith.constant 0 : index
    %41 = vector.load %arg8[%c0_17, %c0_18] : memref<16x128xbf16, #tpu.memory_space<vmem>>, vector<16x128xbf16>
    tpu.vector_store %arg8[%c0_17, %c0_18], %40 {strides = array<i32>} : memref<16x128xbf16, #tpu.memory_space<vmem>>, vector<16x128xbf16>,
    return
  }
  func.func @transform_0(%arg0: i32) -> (i32, i32) {
    %c0_i32 = arith.constant 0 : i32
    %c0_i32_0 = arith.constant 0 : i32
    %c0_i32_1 = arith.constant 0 : i32
    return %c0_i32, %c0_i32_0 : i32, i32
  }
  func.func @transform_1(%arg0: i32) -> (i32, i32) {
    %c0_i32 = arith.constant 0 : i32
    %c0_i32_0 = arith.constant 0 : i32
    %c0_i32_1 = arith.constant 0 : i32
    return %c0_i32, %c0_i32_0 : i32, i32
  }
  func.func @transform_2(%arg0: i32) -> (i32, i32) {
    %c0_i32 = arith.constant 0 : i32
    %c0_i32_0 = arith.constant 0 : i32
    %c0_i32_1 = arith.constant 0 : i32
    return %c0_i32, %c0_i32_0 : i32, i32
  }
  func.func @transform_3(%arg0: i32) -> (i32, i32) {
    %c0_i32 = arith.constant 0 : i32
    %c0_i32_0 = arith.constant 0 : i32
    %c0_i32_1 = arith.constant 0 : i32
    return %c0_i32, %c0_i32_0 : i32, i32
  }
  func.func @transform_4(%arg0: i32) -> (i32, i32) {
    %c0_i32 = arith.constant 0 : i32
    %c0_i32_0 = arith.constant 0 : i32
    %c0_i32_1 = arith.constant 0 : i32
    return %c0_i32, %c0_i32_0 : i32, i32
  }
  func.func @transform_5(%arg0: i32) -> (i32, i32) {
    %c0_i32 = arith.constant 0 : i32
    %c0_i32_0 = arith.constant 0 : i32
    %c0_i32_1 = arith.constant 0 : i32
    return %c0_i32, %c0_i32_0 : i32, i32
  }
  func.func @transform_6(%arg0: i32) -> (i32, i32) {
    %c0_i32 = arith.constant 0 : i32
    %c0_i32_0 = arith.constant 0 : i32
    %c0_i32_1 = arith.constant 0 : i32
    return %c0_i32, %c0_i32_0 : i32, i32
  }
  func.func @transform_7(%arg0: i32) -> (i32, i32) {
    %c0_i32 = arith.constant 0 : i32
    %c0_i32_0 = arith.constant 0 : i32
    %c0_i32_1 = arith.constant 0 : i32
    return %c0_i32, %c0_i32_0 : i32, i32
  }
}

module attributes {stable_mosaic.version = 11 : i64} {
  func.func @score_kernel(%arg0: i32, %arg1: memref<16x128xbf16, #tpu.memory_space<vmem>>, %arg2: memref<128x128xbf16, #tpu.memory_space<vmem>>, %arg3: memref<1x128xf32, #tpu.memory_space<vmem>>, %arg4: memref<16x128xbf16, #tpu.memory_space<vmem>>) attributes {dimension_semantics = [#tpu.dimension_semantics<parallel>], iteration_bounds = array<i64: 1>, scalar_prefetch = 0 : i64, scratch_operands = 0 : i64, tpu.core_type = #tpu.core_type<tc>, window_params = [{pipeline_mode = #tpu.pipeline_mode<synchronous>, transform_indices = @transform_0, window_bounds = array<i64: 16, 128>}, {transform_indices = @transform_1, window_bounds = array<i64: 128, 128>}, {transform_indices = @transform_2, window_bounds = array<i64: 1, 128>}, {transform_indices = @transform_3, window_bounds = array<i64: 16, 128>}]} {
    %c0 = arith.constant 0 : index
    %c0_0 = arith.constant 0 : index
    %0 = vector.load %arg1[%c0, %c0_0] : memref<16x128xbf16, #tpu.memory_space<vmem>>, vector<16x128xbf16>
    %c0_1 = arith.constant 0 : index
    %c0_2 = arith.constant 0 : index
    %1 = vector.load %arg2[%c0_1, %c0_2] : memref<128x128xbf16, #tpu.memory_space<vmem>>, vector<128x128xbf16>
    %cst = arith.constant dense<0.000000e+00> : vector<16x128xf32>
    %2 = tpu.matmul %0, %1, %cst {dimension_numbers = #tpu.dot_dimension_numbers<[1], [1], [0], [0], [0, 0, 1, 0], [], []>} : vector<16x128xbf16>, vector<128x128xbf16>, vector<16x128xf32> -> vector<16x128xf32>
    %c0_3 = arith.constant 0 : index
    %c0_4 = arith.constant 0 : index
    %3 = vector.load %arg3[%c0_3, %c0_4] : memref<1x128xf32, #tpu.memory_space<vmem>>, vector<1x128xf32>
    %4 = vector.broadcast %3 : vector<1x128xf32> to vector<16x128xf32>
    %5 = arith.addf %2, %4 : vector<16x128xf32>
    %6 = arith.truncf %5 : vector<16x128xf32> to vector<16x128xbf16>
    %c0_5 = arith.constant 0 : index
    %c0_6 = arith.constant 0 : index
    %7 = vector.load %arg4[%c0_5, %c0_6] : memref<16x128xbf16, #tpu.memory_space<vmem>>, vector<16x128xbf16>
    tpu.vector_store %arg4[%c0_5, %c0_6], %6 {strides = array<i32>} : memref<16x128xbf16, #tpu.memory_space<vmem>>, vector<16x128xbf16>,
    return
  }
  func.func @transform_0(%arg0: i32) -> (i32, i32) {
    %c0_i32 = arith.constant 0 : i32
    %c0_i32_0 = arith.constant 0 : i32
    %c0_i32_1 = arith.constant 0 : i32
    return %c0_i32, %c0_i32_0 : i32, i32
  }
  func.func @transform_1(%arg0: i32) -> (i32, i32) {
    %c0_i32 = arith.constant 0 : i32
    %c0_i32_0 = arith.constant 0 : i32
    return %arg0, %c0_i32 : i32, i32
  }
  func.func @transform_2(%arg0: i32) -> (i32, i32) {
    %c0_i32 = arith.constant 0 : i32
    %c0_i32_0 = arith.constant 0 : i32
    return %c0_i32, %arg0 : i32, i32
  }
  func.func @transform_3(%arg0: i32) -> (i32, i32) {
    %c0_i32 = arith.constant 0 : i32
    %c0_i32_0 = arith.constant 0 : i32
    return %c0_i32, %arg0 : i32, i32
  }
}

</mosaic_0001>

<bundles_post_ra>
// kernel: gru4rec_forward.3
= control target key start
LH: loop header
LB: loop body
LE: loop exit
PB: predicated region body
PF: predicated region fallthrough
CT: control target
= control target key end

     0   :  { %v208_v0 = vmov 0.0   ;;  %vm209_vm0 = vmmov 0   ;;  %s263_s1 = inlined_call_operand.vmem [shape: bf16[128,128], index: 1, kind: input, shape index: {}]   ;;  %s264_s0 = inlined_call_operand.vmem [shape: bf16[16,128], index: 0, kind: input, shape index: {}]   ;;  %s265_s2 = inlined_call_operand.vmem [shape: f32[1,128], index: 2, kind: input, shape index: {}]   ;;  %s266_s3 = inlined_call_operand.vmem [shape: bf16[16,128], index: 3, kind: output, shape index: {}]  }
   0x1   :  { %177 = vmatprep.subr.bf16.mxu0 %v208_v0  ;;  %v199_v1 = vld [vmem:[%s263_s1 + $0x38] sm:$0xff]   ;;  %193 = vmatprep.mubr.msk.bf16.mxu0 %vm209_vm0, %v208_v0  ;;  %v200_v2 = vld [vmem:[%s263_s1 + $0x30] sm:$0xff]   ;;  %v201_v3 = vld [vmem:[%s263_s1 + $0x28] sm:$0xff]  }
   0x2   :  { %178 = vmatpush3.bf16.xpose.msra.mxu0 %v199_v1  ;;  %v202_v4 = vld [vmem:[%s263_s1 + $0x20] sm:$0xff]   ;;  %v203_v5 = vld [vmem:[%s263_s1 + $0x18] sm:$0xff]   ;;  %v204_v6 = vld [vmem:[%s263_s1 + $0x10] sm:$0xff]  }
   0x3   :  { %179 = vmatprep.subr.bf16.mxu0 %v208_v0  ;;  %v205_v7 = vld [vmem:[%s263_s1 + $0x8] sm:$0xff]   ;;  %v206_v8 = vld [vmem:[%s263_s1] sm:$0xff]  }
   0x4   :  { %v207_v9 = vld [vmem:[%s264_s0] sm:$0xff]  }
   0x5   :  { %v149_v11 = vld [vmem:[%s265_s2] ss:$0 sm:$0xff] }
   0xa   :  { %180 = vmatpush3.bf16.xpose.msra.mxu0 %v200_v2 }
   0xb   :  { %181 = vmatprep.subr.bf16.mxu0 %v208_v0 }
  0x12   :  { %182 = vmatpush3.bf16.xpose.msra.mxu0 %v201_v3 }
  0x13   :  { %183 = vmatprep.subr.bf16.mxu0 %v208_v0 }
  0x1a   :  { %184 = vmatpush3.bf16.xpose.msra.mxu0 %v202_v4 }
  0x1b   :  { %185 = vmatprep.subr.bf16.mxu0 %v208_v0 }
  0x22   :  { %186 = vmatpush3.bf16.xpose.msra.mxu0 %v203_v5 }
  0x23   :  { %187 = vmatprep.subr.bf16.mxu0 %v208_v0 }
  0x2a   :  { %188 = vmatpush3.bf16.xpose.msra.mxu0 %v204_v6 }
  0x2b   :  { %189 = vmatprep.subr.bf16.mxu0 %v208_v0 }
  0x32   :  { %190 = vmatpush3.bf16.xpose.msra.mxu0 %v205_v7 }
  0x33   :  { %191 = vmatprep.subr.bf16.mxu0 %v208_v0 }
  0x3a   :  { %192 = vmatpush3.bf16.xpose.msra.mxu0 %v206_v8 }
  0x41   :  { %194 = vmatmul.mubr.bf16.vlgmr.msra.gmra.mxu0 %v207_v9 }
 0x101   :  { %v128_v10 = vpop.f32.mrf.mxu0 }
 0x102   :  { %v129_v14 = vadd.f32 %v149_v11, %v128_v10 }
 0x103   :  { %v195_v12 = vpop.f32.mrf.mxu0 }
 0x105   :  { %v131_v13 = vpop.f32.mrf.mxu0 }
 0x106   :  { %v132_v15 = vadd.f32 %v149_v11, %v131_v13 }
 0x107   :  { %v196_v16 = vpop.f32.mrf.mxu0 }
 0x108   :  { %v166_v17 = vpack.c.bf16 %v132_v15, %v129_v14 }
 0x10a   :  { %167 = vst [vmem:[%s266_s3] sm:$0xff] %v166_v17  }

// kernel: gru4rec_forward.2
= control target key start
LH: loop header
LB: loop body
LE: loop exit
PB: predicated region body
PF: predicated region fallthrough
CT: control target
= control target key end

     0   :  { %v829_v1 = vmov 0.0   ;;  %v830_v2 = vmov 0   ;;  %vm831_vm0 = vmmov 0   ;;  %v64_v58 = vlaneseq  ;;  %s1076_s2 = inlined_call_operand.vmem [shape: bf16[128,384], index: 2, kind: input, shape index: {}]   ;;  %s1077_s0 = inlined_call_operand.vmem [shape: bf16[16,128], index: 0, kind: input, shape index: {}]   ;;  %s1078_s3 = inlined_call_operand.vmem [shape: bf16[128,384], index: 3, kind: input, shape index: {}]   ;;  %s1079_s1 = inlined_call_operand.vmem [shape: f32[16,128], index: 1, kind: input, shape index: {}, may-alias: {1,6}]   ;;  %s1080_s4 = inlined_call_operand.vmem [shape: f32[1,384], index: 4, kind: input, shape index: {}]   ;;  %s1081_s5 = inlined_call_operand.vmem [shape: f32[1,384], index: 5, kind: input, shape index: {}]   ;;  %s1082_s6 = inlined_call_operand.vmem [shape: f32[16,128], index: 6, kind: output, shape index: {0}, may-alias: {1,6}]   ;;  %s1083_s7 = inlined_call_operand.vmem [shape: bf16[16,128], index: 7, kind: output, shape index: {1}]  }
   0x1   :  { %v744_v0 = vld [vmem:[%s1076_s2 + $0xac] ss:$12 sps:$4 sm:$0xff]   ;;  %701 = vmatprep.subr.bf16.mxu1 %v829_v1  ;;  %245 = vmatprep.mubr.bf16.mxu0 %v830_v2  ;;  %v746_v3 = vld [vmem:[%s1076_s2 + $0xa8] ss:$12 sps:$4 sm:$0xff]   ;;  %v749_v5 = vld [vmem:[%s1076_s2 + $0x90] ss:$12 sps:$4 sm:$0xff]  }
   0x2   :  { %717 = vmatprep.mubr.msk.bf16.mxu1 %vm831_vm0, %v829_v1  ;;  %213 = vmatprep.subr.bf16.mxu0 %v744_v0  ;;  %v747_v4 = vld [vmem:[%s1076_s2 + $0x94] ss:$12 sps:$4 sm:$0xff]   ;;  %v750_v6 = vld [vmem:[%s1076_s2 + $0x7c] ss:$12 sps:$4 sm:$0xff]   ;;  %v752_v7 = vld [vmem:[%s1076_s2 + $0x78] ss:$12 sps:$4 sm:$0xff]  }
   0x3   :  { %214 = vmatpush1.bf16.msra.mxu0 %v746_v3  ;;  %v753_v8 = vld [vmem:[%s1076_s2 + $0x64] ss:$12 sps:$4 sm:$0xff]   ;;  %v755_v9 = vld [vmem:[%s1076_s2 + $0x60] ss:$12 sps:$4 sm:$0xff]   ;;  %v758_v13 = vld [vmem:[%s1076_s2 + $0x48] ss:$12 sps:$4 sm:$0xff]  }
   0x4   :  { %215 = vmatprep.subr.bf16.mxu0 %v747_v4  ;;  %v768_v10 = vld [vmem:[%s1076_s2 + $0xb0] ss:$12 sps:$4 sm:$0xff]   ;;  %v756_v11 = vld [vmem:[%s1076_s2 + $0x4c] ss:$12 sps:$4 sm:$0xff]   ;;  %v759_v14 = vld [vmem:[%s1076_s2 + $0x34] ss:$12 sps:$4 sm:$0xff]  }
   0x5   :  { %702 = vmatpush3.bf16.msra.mxu1 %v768_v10  ;;  %v773_v12 = vld [vmem:[%s1076_s2 + $0x98] ss:$12 sps:$4 sm:$0xff]   ;;  %v777_v15 = vld [vmem:[%s1076_s2 + $0x80] ss:$12 sps:$4 sm:$0xff]   ;;  %v761_v16 = vld [vmem:[%s1076_s2 + $0x30] ss:$12 sps:$4 sm:$0xff]  }
   0x6   :  { %703 = vmatprep.subr.bf16.mxu1 %v829_v1  ;;  %v762_v17 = vld [vmem:[%s1076_s2 + $0x1c] ss:$12 sps:$4 sm:$0xff]   ;;  %v764_v19 = vld [vmem:[%s1076_s2 + $0x18] ss:$12 sps:$4 sm:$0xff]   ;;  %v767_v22 = vld [vmem:[%s1076_s2] ss:$12 sps:$4 sm:$0xff]  }
   0x7   :  { %216 = vmatpush1.bf16.msra.mxu0 %v749_v5  ;;  %v781_v18 = vld [vmem:[%s1076_s2 + $0x68] ss:$12 sps:$4 sm:$0xff]   ;;  %v765_v20 = vld [vmem:[%s1076_s2 + $0x4] ss:$12 sps:$4 sm:$0xff]   ;;  %v772_v23 = vld [vmem:[%s1078_s3 + $0xac] ss:$12 sps:$4 sm:$0xff]  }
   0x8   :  { %217 = vmatprep.subr.bf16.mxu0 %v750_v6  ;;  %v785_v21 = vld [vmem:[%s1076_s2 + $0x50] ss:$12 sps:$4 sm:$0xff]   ;;  %v789_v24 = vld [vmem:[%s1076_s2 + $0x38] ss:$12 sps:$4 sm:$0xff]   ;;  %v770_v26 = vld [vmem:[%s1078_s3 + $0xa8] ss:$12 sps:$4 sm:$0xff]  }
   0x9   :  { %704 = vmatpush3.bf16.msra.mxu1 %v773_v12  ;;  %v769_v25 = vld [vmem:[%s1077_s0] sm:$0xff]   ;;  %v774_v29 = vld [vmem:[%s1078_s3 + $0x90] ss:$12 sps:$4 sm:$0xff]   ;;  %v797_v31 = vld [vmem:[%s1076_s2 + $0x8] ss:$12 sps:$4 sm:$0xff]   ;;  %v65_v60 = vshrl.u32 %v64_v58, 7 }
   0xa   :  { %705 = vmatprep.subr.bf16.mxu1 %v829_v1  ;;  %v776_v27 = vld [vmem:[%s1078_s3 + $0x94] ss:$12 sps:$4 sm:$0xff]   ;;  %v780_v30 = vld [vmem:[%s1078_s3 + $0x7c] ss:$12 sps:$4 sm:$0xff]   ;;  %v778_v32 = vld [vmem:[%s1078_s3 + $0x78] ss:$12 sps:$4 sm:$0xff]  }
   0xb   :  { %218 = vmatpush1.bf16.msra.mxu0 %v752_v7  ;;  %v793_v28 = vld [vmem:[%s1076_s2 + $0x20] ss:$12 sps:$4 sm:$0xff]   ;;  %v784_v33 = vld [vmem:[%s1078_s3 + $0x64] ss:$12 sps:$4 sm:$0xff]   ;;  %v786_v38 = vld [vmem:[%s1078_s3 + $0x48] ss:$12 sps:$4 sm:$0xff]  }
   0xc   :  { %219 = vmatprep.subr.bf16.mxu0 %v753_v8  ;;  %v801_v34 = vld [vmem:[%s1078_s3 + $0xb0] ss:$12 sps:$4 sm:$0xff]   ;;  %v782_v35 = vld [vmem:[%s1078_s3 + $0x60] ss:$12 sps:$4 sm:$0xff]   ;;  %v802_v37 = vld [vmem:[%s1078_s3 + $0x98] ss:$12 sps:$4 sm:$0xff]  }
   0xd   :  { %706 = vmatpush3.bf16.msra.mxu1 %v777_v15  ;;  %v788_v36 = vld [vmem:[%s1078_s3 + $0x4c] ss:$12 sps:$4 sm:$0xff]   ;;  %v792_v39 = vld [vmem:[%s1078_s3 + $0x34] ss:$12 sps:$4 sm:$0xff]   ;;  %v790_v41 = vld [vmem:[%s1078_s3 + $0x30] ss:$12 sps:$4 sm:$0xff]  }
   0xe   :  { %707 = vmatprep.subr.bf16.mxu1 %v829_v1  ;;  %v803_v40 = vld [vmem:[%s1078_s3 + $0x80] ss:$12 sps:$4 sm:$0xff]   ;;  %v796_v42 = vld [vmem:[%s1078_s3 + $0x1c] ss:$12 sps:$4 sm:$0xff]   ;;  %v794_v44 = vld [vmem:[%s1078_s3 + $0x18] ss:$12 sps:$4 sm:$0xff]  }
   0xf   :  { %220 = vmatpush1.bf16.msra.mxu0 %v755_v9  ;;  %v804_v43 = vld [vmem:[%s1078_s3 + $0x68] ss:$12 sps:$4 sm:$0xff]   ;;  %v800_v45 = vld [vmem:[%s1078_s3 + $0x4] ss:$12 sps:$4 sm:$0xff]   ;;  %v798_v47 = vld [vmem:[%s1078_s3] ss:$12 sps:$4 sm:$0xff]  }
  0x10   :  { %221 = vmatprep.subr.bf16.mxu0 %v756_v11  ;;  %v805_v46 = vld [vmem:[%s1078_s3 + $0x50] ss:$12 sps:$4 sm:$0xff]   ;;  %v1032_v48 = vld [vmem:[%s1079_s1] sm:$0xff]  ;;  %v1037_v49 = vld [vmem:[%s1079_s1 + $0x8] sm:$0xff]  ;;  %v66_v62 = vsub.s32 0, %v65_v60  ;;  %v70_v5 = vsub.s32 1, %v65_v60 }
  0x11   :  { %708 = vmatpush3.bf16.msra.mxu1 %v781_v18  ;;  %v806_v50 = vld [vmem:[%s1078_s3 + $0x38] ss:$12 sps:$4 sm:$0xff]   ;;  %v297_v51 = vpack.c.bf16 %v1037_v49, %v1032_v48  ;;  %v807_v52 = vld [vmem:[%s1078_s3 + $0x20] ss:$12 sps:$4 sm:$0xff]   ;;  %v808_v53 = vld [vmem:[%s1078_s3 + $0x8] ss:$12 sps:$4 sm:$0xff]  }
  0x12   :  { %709 = vmatprep.subr.bf16.mxu1 %v829_v1  ;;  %v62_v63 = vld [vmem:[%s1080_s4] sm:$0x7] }
  0x13   :  { %222 = vmatpush1.bf16.msra.mxu0 %v758_v13  ;;  %v71_v11 = vrot.slane %v62_v63, %v70_v5 }
  0x14   :  { %223 = vmatprep.subr.bf16.mxu0 %v759_v14 }
  0x15   :  { %710 = vmatpush3.bf16.msra.mxu1 %v785_v21 }
  0x16   :  { %711 = vmatprep.subr.bf16.mxu1 %v829_v1 }
  0x17   :  { %224 = vmatpush1.bf16.msra.mxu0 %v761_v16 }
  0x18   :  { %225 = vmatprep.subr.bf16.mxu0 %v762_v17 }
  0x19   :  { %712 = vmatpush3.bf16.msra.mxu1 %v789_v24 }
  0x1a   :  { %713 = vmatprep.subr.bf16.mxu1 %v829_v1 }
  0x1b   :  { %226 = vmatpush1.bf16.msra.mxu0 %v764_v19 }
  0x1c   :  { %227 = vmatprep.subr.bf16.mxu0 %v765_v20 }
  0x1d   :  { %714 = vmatpush3.bf16.msra.mxu1 %v793_v28 }
  0x1e   :  { %715 = vmatprep.subr.bf16.mxu1 %v829_v1 }
  0x1f   :  { %228 = vmatpush1.bf16.msra.mxu0 %v767_v22 }
  0x20   :  { %475 = vmatprep.subr.bf16.mxu0 %v772_v23 }
  0x21   :  { %716 = vmatpush3.bf16.msra.mxu1 %v797_v31 }
  0x22   :  { %246 = vmatmul.mubr.bf16.vlgmr.msra.gmra.mxu0 %v769_v25  ;;  %721 = vmatprep.subr.bf16.mxu1 %v829_v1 }
  0x23   :  { %476 = vmatpush1.bf16.msra.mxu0 %v770_v26  ;;  %507 = vmatprep.mubr.bf16.mxu0 %v830_v2  ;;  %v67_v2 = vrot.slane %v62_v63, %v66_v62 }
  0x24   :  { %477 = vmatprep.subr.bf16.mxu0 %v776_v27  ;;  %718 = vmatmul.mubr.bf16.vlgmr.msra.gmra.mxu1 %v769_v25 }
  0x25   :  { %722 = vmatpush3.bf16.msra.mxu1 %v801_v34  ;;  %737 = vmatprep.mubr.msk.bf16.mxu1 %vm831_vm0, %v829_v1 }
  0x26   :  { %723 = vmatprep.subr.bf16.mxu1 %v829_v1 }
  0x27   :  { %478 = vmatpush1.bf16.msra.mxu0 %v774_v29 }
  0x28   :  { %479 = vmatprep.subr.bf16.mxu0 %v780_v30 }
  0x29   :  { %724 = vmatpush3.bf16.msra.mxu1 %v802_v37 }
  0x2a   :  { %725 = vmatprep.subr.bf16.mxu1 %v829_v1 }
  0x2b   :  { %480 = vmatpush1.bf16.msra.mxu0 %v778_v32 }
  0x2c   :  { %481 = vmatprep.subr.bf16.mxu0 %v784_v33 }
  0x2d   :  { %726 = vmatpush3.bf16.msra.mxu1 %v803_v40 }
  0x2e   :  { %727 = vmatprep.subr.bf16.mxu1 %v829_v1 }
  0x2f   :  { %482 = vmatpush1.bf16.msra.mxu0 %v782_v35 }
  0x30   :  { %483 = vmatprep.subr.bf16.mxu0 %v788_v36  ;;  %v74_v36 = vsub.s32 2, %v65_v60 }
  0x31   :  { %728 = vmatpush3.bf16.msra.mxu1 %v804_v43 }
  0x32   :  { %729 = vmatprep.subr.bf16.mxu1 %v829_v1  ;;  %v75_v40 = vrot.slane %v62_v63, %v74_v36 }
  0x33   :  { %484 = vmatpush1.bf16.msra.mxu0 %v786_v38 }
  0x34   :  { %485 = vmatprep.subr.bf16.mxu0 %v792_v39 }
  0x35   :  { %730 = vmatpush3.bf16.msra.mxu1 %v805_v46 }
  0x36   :  { %731 = vmatprep.subr.bf16.mxu1 %v829_v1 }
  0x37   :  { %486 = vmatpush1.bf16.msra.mxu0 %v790_v41 }
  0x38   :  { %487 = vmatprep.subr.bf16.mxu0 %v796_v42 }
  0x39   :  { %732 = vmatpush3.bf16.msra.mxu1 %v806_v50 }
  0x3a   :  { %733 = vmatprep.subr.bf16.mxu1 %v829_v1 }
  0x3b   :  { %488 = vmatpush1.bf16.msra.mxu0 %v794_v44 }
  0x3c   :  { %489 = vmatprep.subr.bf16.mxu0 %v800_v45 }
  0x3d   :  { %734 = vmatpush3.bf16.msra.mxu1 %v807_v52 }
  0x3e   :  { %735 = vmatprep.subr.bf16.mxu1 %v829_v1  ;;  %v330_v1 = vld [vmem:[%s1081_s5] sm:$0x7] }
  0x3f   :  { %490 = vmatpush1.bf16.msra.mxu0 %v798_v47  ;;  %v335_v3 = vrot.slane %v330_v1, %v66_v62  ;;  %v339_v9 = vrot.slane %v330_v1, %v70_v5  ;;  %v343_v37 = vrot.slane %v330_v1, %v74_v36 }
  0x41   :  { %736 = vmatpush3.bf16.msra.mxu1 %v808_v53 }
  0x42   :  { %508 = vmatmul.mubr.bf16.vlgmr.msra.gmra.mxu0 %v297_v51 }
  0x44   :  { %738 = vmatmul.mubr.bf16.vlgmr.msra.gmra.mxu1 %v297_v51 }
  0xe2   :  { %v247_v59 = vpop.f32.mrf.mxu0 }
  0xe3   :  { %v248_v7 = vadd.f32 %v247_v59, %v67_v2 }
  0xe4   :  { %v1053_v54 = vpop.f32.mrf.mxu1  ;;  %v249_v61 = vpop.f32.mrf.mxu0 }
  0xe5   :  { %v250_v19 = vadd.f32 %v249_v61, %v71_v11  ;;  %v291_v45 = vadd.f32 %v1053_v54, %v75_v40 }
  0xe6   :  { %v719_v55 = vpop.f32.mrf.mxu1  ;;  %v251_v0 = vpop.f32.mrf.mxu0 }
  0xe7   :  { %v252_v14 = vadd.f32 %v251_v0, %v67_v2 }
  0xe8   :  { %v1055_v56 = vpop.f32.mrf.mxu1  ;;  %v253_v4 = vpop.f32.mrf.mxu0 }
  0xe9   :  { %v254_v24 = vadd.f32 %v253_v4, %v71_v11  ;;  %v294_v52 = vadd.f32 %v1055_v56, %v75_v40 }
  0xea   :  { %v720_v57 = vpop.f32.mrf.mxu1 }
 0x102   :  { %v509_v6 = vpop.f32.mrf.mxu0 }
 0x103   :  { %v510_v8 = vadd.f32 %v509_v6, %v335_v3 }
 0x104   :  { %v511_v10 = vpop.f32.mrf.mxu0  ;;  %v552_v25 = vpop.f32.mrf.mxu1 }
 0x105   :  { %v559_v12 = vadd.f32 %v510_v8, %v248_v7  ;;  %v512_v16 = vadd.f32 %v511_v10, %v339_v9  ;;  %v553_v42 = vadd.f32 %v552_v25, %v343_v37 }
 0x106   :  { %v513_v13 = vpop.f32.mrf.mxu0  ;;  %v739_v27 = vpop.f32.mrf.mxu1 }
 0x107   :  { %v670_v15 = vmul.f32 -1.442695, %v559_v12  ;;  %v514_v17 = vadd.f32 %v513_v13, %v335_v3  ;;  %v573_v22 = vadd.f32 %v512_v16, %v250_v19 }
 0x108   :  { %v515_v18 = vpop.f32.mrf.mxu0  ;;  %v555_v29 = vpop.f32.mrf.mxu1 }
 0x109   :  { %809 = vpow2.f32 %v670_v15  ;;  %v560_v20 = vadd.f32 %v514_v17, %v252_v14  ;;  %v516_v21 = vadd.f32 %v515_v18, %v339_v9  ;;  %v672_v28 = vmul.f32 -1.442695, %v573_v22 }
 0x10a   :  { %v740_v31 = vpop.f32.mrf.mxu1  ;;  %v556_v50 = vadd.f32 %v555_v29, %v343_v37 }
 0x10b   :  { %v671_v23 = vmul.f32 -1.442695, %v560_v20  ;;  %v574_v26 = vadd.f32 %v516_v21, %v254_v24 }
 0x10d   :  { %811 = vpow2.f32 %v671_v23  ;;  %v673_v30 = vmul.f32 -1.442695, %v574_v26 }
 0x10e   :  { %813 = vpow2.f32 %v672_v28 }
 0x10f   :  { %815 = vpow2.f32 %v673_v30 }
 0x116   :  { %v810_v32 = vpop.eup %809 }
 0x117   :  { %v567_v33 = vadd.f32 1.0, %v810_v32 }
 0x119   :  { %817 = vrcp.f32 %v567_v33 }
 0x11a   :  { %v812_v34 = vpop.eup %811 }
 0x11b   :  { %v568_v35 = vadd.f32 1.0, %v812_v34  ;;  %v814_v38 = vpop.eup %813 }
 0x11c   :  { %v816_v39 = vpop.eup %815  ;;  %v581_v41 = vadd.f32 1.0, %v814_v38 }
 0x11d   :  { %819 = vrcp.f32 %v568_v35  ;;  %v582_v44 = vadd.f32 1.0, %v816_v39 }
 0x11e   :  { %821 = vrcp.f32 %v581_v41 }
 0x11f   :  { %823 = vrcp.f32 %v582_v44 }
 0x126   :  { %v818_v43 = vpop.eup %817 }
 0x127   :  { %v587_v46 = vmul.f32 %v818_v43, %v553_v42 }
 0x129   :  { %v589_v47 = vadd.f32 %v587_v46, %v291_v45 }
 0x12a   :  { %v820_v51 = vpop.eup %819 }
 0x12b   :  { %825 = vtanh.f32 %v589_v47  ;;  %v588_v53 = vmul.f32 %v820_v51, %v556_v50  ;;  %v822_v57 = vpop.eup %821 }
 0x12c   :  { %v824_v58 = vpop.eup %823  ;;  %v593_v59 = vsub.f32 1.0, %v822_v57  ;;  %v597_v61 = vmul.f32 %v822_v57, %v1032_v48 }
 0x12d   :  { %v590_v55 = vadd.f32 %v588_v53, %v294_v52  ;;  %v594_v63 = vsub.f32 1.0, %v824_v58  ;;  %v598_v1 = vmul.f32 %v824_v58, %v1037_v49 }
 0x12f   :  { %827 = vtanh.f32 %v590_v55 }
 0x138   :  { %v826_v60 = vpop.eup %825 }
 0x139   :  { %v595_v62 = vmul.f32 %v826_v60, %v593_v59 }
 0x13b   :  { %v599_v54 = vadd.f32 %v597_v61, %v595_v62 }
 0x13c   :  { %v828_v0 = vpop.eup %827 }
 0x13d   :  { %601 = vst [vmem:[%s1082_s6] sm:$0xff] %v599_v54  ;;  %v596_v56 = vmul.f32 %v828_v0, %v594_v63 }
 0x13f   :  { %v600_v2 = vadd.f32 %v598_v1, %v596_v56 }
 0x141   :  { %602 = vst [vmem:[%s1082_s6 + $0x8] sm:$0xff] %v600_v2  ;;  %v681_v3 = vpack.c.bf16 %v600_v2, %v599_v54 }
 0x143   :  { %682 = vst [vmem:[%s1083_s7] sm:$0xff] %v681_v3  }

</bundles_post_ra>
